<compile_context>
chip_gen: v7x
topology: tpu7x:2x2x1
jax: 0.10.0
libtpu: 0.0.40
codegen_flags: <defaults>
</compile_context>

<pallas_src>
import functools

import jax
import jax.numpy as jnp
from jax import lax
from jax.experimental import pallas as pl
from jax.experimental.pallas import tpu as pltpu


def _cross_att_kernel(x1_ref, x2_ref,
                      wgp_ref, bgp_ref,     # fused [g | phi] projection (pre-transposed)
                      wth_ref, bth_ref,     # theta projection (pre-transposed)
                      wz_ref, bz_ref,       # W_z (pre-transposed)
                      out_ref, *, cint):
    bt, s, cin = x1_ref.shape
    cdt = wgp_ref.dtype                     # MXU operand dtype (f32 toy / bf16 prod)

    x1 = x1_ref[...]                        # (Bt, S, Cin) f32
    x2 = x2_ref[...]
    # Merge leading dims only (last dim unchanged, S % 8 == 0) -> cheap relayout.
    x1f = x1.reshape(bt * s, cin).astype(cdt)
    x2f = x2.reshape(bt * s, cin).astype(cdt)

    # Fused projections of x1: one matmul with N = 2*Cint, then static lane slices.
    gp = jnp.dot(x1f, wgp_ref[...],
                 preferred_element_type=jnp.float32) + bgp_ref[...]      # (Bt*S, 2*Cint)
    g = gp[:, :cint].reshape(bt, s, cint)                                # (Bt, S, Cint)
    ph = gp[:, cint:].reshape(bt, s, cint)                               # (Bt, S, Cint)

    th = (jnp.dot(x2f, wth_ref[...], preferred_element_type=jnp.float32)
          + bth_ref[...]).reshape(bt, s, cint)                           # (Bt, S, Cint)

    # f[b,a,c] = sum_s th[b,s,a] * ph[b,s,c]   (== theta_x @ phi_x, no explicit .T)
    f = jnp.einsum("bsa,bsc->bac", th.astype(cdt), ph.astype(cdt),
                   preferred_element_type=jnp.float32)                   # (Bt, Cint, Cint)

    # Softmax over the last (lane) dim in f32; approx reciprocal rides the EUP slot.
    f = f - jnp.max(f, axis=-1, keepdims=True)
    p = jnp.exp(f)
    f_div = p * pl.reciprocal(jnp.sum(p, axis=-1, keepdims=True), approx=True)

    # y_t[b,d,a] = sum_c g[b,d,c] * f_div[b,a,c]  — this IS y.permute(0,2,1) directly,
    # so the explicit transpose from the PyTorch code never materializes.
    y_t = jnp.einsum("bdc,bac->bda", g.astype(cdt), f_div.astype(cdt),
                     preferred_element_type=jnp.float32)                 # (Bt, S, Cint)

    w_y = (jnp.dot(y_t.reshape(bt * s, cint).astype(cdt), wz_ref[...],
                   preferred_element_type=jnp.float32)
           + bz_ref[...]).reshape(bt, s, cin)                            # (Bt, S, Cin)

    out_ref[...] = (w_y + x1).astype(out_ref.dtype)


def _pick_batch_tile(B, S, Cin, itemsize, target_rows=512, act_budget_bytes=24 << 20):
    """Batch-tile size: fill the MXU M dim, respect VMEM, keep the grid exact."""
    bt = max(1, min(B, max(1, target_rows // max(S, 1))))
    # Three activation blocks (x1, x2, out), each double-buffered, must fit the budget.
    while bt > 1 and 3 * 2 * bt * S * Cin * itemsize > act_budget_bytes:
        bt -= 1
    while B % bt:            # exact grid
        bt -= 1
    # Keep >= 2 grid steps when possible so both v7x TensorCores get work.
    if B // bt < 2 and B >= 2:
        bt = max(1, B // 2)
        while B % bt:
            bt -= 1
    return bt


def cross_att_pallas(x1, x2, params, compute_dtype=None):
    B, S, Cin = x1.shape
    Cint = params["wg"].shape[0]
    assert S == Cin == Cint, \
        "PyTorch forward is only shape-consistent when S == in_channels == inter_channels"

    # bf16 MXU operands at production channel counts; exact f32 at toy sizes.
    if compute_dtype is None:
        compute_dtype = jnp.bfloat16 if Cint >= 128 else jnp.float32

    # --- host-side weight prep (done once, outside the kernel) ------------------
    # Pre-transpose so the kernel never does W.T, and fuse the two x1 projections.
    wgp = jnp.concatenate([params["wg"].T, params["wph"].T], axis=1).astype(compute_dtype)
    bgp = jnp.concatenate([params["bg"], params["bph"]], axis=1)          # f32
    wth_t = params["wth"].T.astype(compute_dtype)
    wz_t = params["wz"].T.astype(compute_dtype)
    bth = params["bth"]
    bz = params["bz"]

    itemsize = jnp.dtype(x1.dtype).itemsize
    Bt = _pick_batch_tile(B, S, Cin, itemsize)
    grid = (B // Bt,)

    # --- cost estimate (lets XLA overlap the custom call) ------------------------
    flops = B * 2 * (S * Cin * 2 * Cint     # fused g|phi projection
                     + S * Cin * Cint       # theta projection
                     + Cint * Cint * S      # f = theta^T @ phi
                     + S * Cint * Cint      # y
                     + S * Cint * Cin)      # W_z
    weight_bytes = sum(int(a.size) * a.dtype.itemsize
                       for a in (wgp, bgp, wth_t, bth, wz_t, bz))
    act_bytes = 3 * B * S * Cin * itemsize                     # x1 + x2 read, out write
    cost = pl.CostEstimate(flops=int(flops),
                           transcendentals=int(B * Cint * Cint),
                           bytes_accessed=int(act_bytes + weight_bytes))

    # --- explicit VMEM budget -----------------------------------------------------
    act_block = Bt * S * Cin * itemsize
    interm = Bt * S * (2 * Cint + Cint + Cin) * 4 + 2 * Bt * Cint * Cint * 4
    needed = 3 * 2 * act_block + 2 * weight_bytes + interm
    vmem_limit = int(min(max(2 * needed, 32 << 20), 64 << 20))

    def wspec(shape):
        # Constant block index -> weights stay VMEM-resident across grid steps.
        return pl.BlockSpec(shape, lambda b: (0, 0))

    kernel = functools.partial(_cross_att_kernel, cint=Cint)

    return pl.pallas_call(
        kernel,
        out_shape=jax.ShapeDtypeStruct((B, S, Cin), x1.dtype),
        grid=grid,
        in_specs=[
            pl.BlockSpec((Bt, S, Cin), lambda b: (b, 0, 0)),   # x1
            pl.BlockSpec((Bt, S, Cin), lambda b: (b, 0, 0)),   # x2
            wspec((Cin, 2 * Cint)), wspec((1, 2 * Cint)),      # fused [g | phi] W / b
            wspec((Cin, Cint)), wspec((1, Cint)),              # theta W / b
            wspec((Cint, Cin)), wspec((1, Cin)),               # W_z W / b
        ],
        out_specs=pl.BlockSpec((Bt, S, Cin), lambda b: (b, 0, 0)),
        input_output_aliases={0: 0},       # out = x1 + W_y : reuse x1's buffer
        compiler_params=pltpu.CompilerParams(
            dimension_semantics=("parallel",),
            vmem_limit_bytes=vmem_limit,
        ),
        cost_estimate=cost,
    )(x1, x2, wgp, bgp, wth_t, bth, wz_t, bz)


def cross_att_reference(x1, x2, params):
    """Pure-JAX transcription of the PyTorch forward (view == reshape, permute == transpose)."""
    B = x1.shape[0]
    Cint = params["wg"].shape[0]
    lin = lambda x, w, b: jnp.einsum("...i,oi->...o", x, w) + b

    g_x = lin(x1, params["wg"], params["bg"][0]).reshape(B, Cint, -1).transpose(0, 2, 1)
    theta_x = lin(x2, params["wth"], params["bth"][0]).reshape(B, Cint, -1).transpose(0, 2, 1)
    phi_x = lin(x1, params["wph"], params["bph"][0]).reshape(B, Cint, -1)
    f = jnp.matmul(theta_x, phi_x)
    f_div = jax.nn.softmax(f, axis=-1)
    y = jnp.matmul(f_div, g_x)
    y = jnp.transpose(y, (0, 2, 1)).reshape(B, Cint, *x1.shape[2:])
    w_y = lin(y, params["wz"], params["bz"][0])
    return w_y + x1


def make_params(key, in_channels, inter_channels):
    ks = jax.random.split(key, 8)
    scale = 0.05
    return {
        "wg":  scale * jax.random.normal(ks[0], (inter_channels, in_channels), jnp.float32),
        "bg":  scale * jax.random.normal(ks[1], (1, inter_channels), jnp.float32),
        "wth": scale * jax.random.normal(ks[2], (inter_channels, in_channels), jnp.float32),
        "bth": scale * jax.random.normal(ks[3], (1, inter_channels), jnp.float32),
        "wph": scale * jax.random.normal(ks[4], (inter_channels, in_channels), jnp.float32),
        "bph": scale * jax.random.normal(ks[5], (1, inter_channels), jnp.float32),
        # Original module: nn.init.constant_(W_z, 0) -> identity output; we use
        # deterministic random values instead so the kernel path is exercised.
        "wz":  scale * jax.random.normal(ks[6], (in_channels, inter_channels), jnp.float32),
        "bz":  scale * jax.random.normal(ks[7], (1, in_channels), jnp.float32),
    }


if __name__ == "__main__":
    B = 2
    C = 32                      # in_channels == inter_channels == seq length (square case)
    key = jax.random.PRNGKey(0)
    k1, k2, kp = jax.random.split(key, 3)
    x1 = jax.random.normal(k1, (B, C, C), jnp.float32)
    x2 = jax.random.normal(k2, (B, C, C), jnp.float32)
    params = make_params(kp, in_channels=C, inter_channels=C)

    ref = jax.block_until_ready(cross_att_reference(x1, x2, params))

    # Donate x1 so input_output_aliases={0: 0} avoids a defensive HBM copy.
    cross_att = jax.jit(cross_att_pallas, donate_argnums=(0,))
    out = jax.block_until_ready(cross_att(x1, x2, params))

    assert out.shape == ref.shape == (B, C, C)
    max_err = float(jnp.max(jnp.abs(out - ref)))
    # slightly relaxed vs exact-f32 to accommodate the approx (EUP) reciprocal in softmax
    assert jnp.allclose(out, ref, atol=2e-4, rtol=2e-4), max_err

    print("KERNEL_OK")
</pallas_src>

<mosaic_0001>
module attributes {stable_mosaic.version = 11 : i64} {
  func.func @_cross_att_kernel(%arg0: i32, %arg1: memref<1x32x32xf32, #tpu.memory_space<vmem>>, %arg2: memref<1x32x32xf32, #tpu.memory_space<vmem>>, %arg3: memref<32x64xf32, #tpu.memory_space<vmem>>, %arg4: memref<1x64xf32, #tpu.memory_space<vmem>>, %arg5: memref<32x32xf32, #tpu.memory_space<vmem>>, %arg6: memref<1x32xf32, #tpu.memory_space<vmem>>, %arg7: memref<32x32xf32, #tpu.memory_space<vmem>>, %arg8: memref<1x32xf32, #tpu.memory_space<vmem>>, %arg9: memref<1x32x32xf32, #tpu.memory_space<vmem>>) attributes {dimension_semantics = [#tpu.dimension_semantics<parallel>], iteration_bounds = array<i64: 2>, scalar_prefetch = 0 : i64, scratch_operands = 0 : i64, tpu.core_type = #tpu.core_type<tc>, window_params = [{transform_indices = @transform_0, window_bounds = array<i64: 1, 32, 32>}, {transform_indices = @transform_1, window_bounds = array<i64: 1, 32, 32>}, {pipeline_mode = #tpu.pipeline_mode<synchronous>, transform_indices = @transform_2, window_bounds = array<i64: 32, 64>}, {pipeline_mode = #tpu.pipeline_mode<synchronous>, transform_indices = @transform_3, window_bounds = array<i64: 1, 64>}, {pipeline_mode = #tpu.pipeline_mode<synchronous>, transform_indices = @transform_4, window_bounds = array<i64: 32, 32>}, {pipeline_mode = #tpu.pipeline_mode<synchronous>, transform_indices = @transform_5, window_bounds = array<i64: 1, 32>}, {pipeline_mode = #tpu.pipeline_mode<synchronous>, transform_indices = @transform_6, window_bounds = array<i64: 32, 32>}, {pipeline_mode = #tpu.pipeline_mode<synchronous>, transform_indices = @transform_7, window_bounds = array<i64: 1, 32>}, {transform_indices = @transform_8, window_bounds = array<i64: 1, 32, 32>}]} {
    %c0 = arith.constant 0 : index
    %c0_0 = arith.constant 0 : index
    %c0_1 = arith.constant 0 : index
    %0 = vector.load %arg1[%c0, %c0_0, %c0_1] : memref<1x32x32xf32, #tpu.memory_space<vmem>>, vector<1x32x32xf32>
    %c0_2 = arith.constant 0 : index
    %c0_3 = arith.constant 0 : index
    %c0_4 = arith.constant 0 : index
    %1 = vector.load %arg2[%c0_2, %c0_3, %c0_4] : memref<1x32x32xf32, #tpu.memory_space<vmem>>, vector<1x32x32xf32>
    %2 = vector.shape_cast %0 : vector<1x32x32xf32> to vector<32x32xf32>
    %3 = vector.shape_cast %1 : vector<1x32x32xf32> to vector<32x32xf32>
    %c0_5 = arith.constant 0 : index
    %c0_6 = arith.constant 0 : index
    %4 = vector.load %arg3[%c0_5, %c0_6] : memref<32x64xf32, #tpu.memory_space<vmem>>, vector<32x64xf32>
    %cst = arith.constant dense<0.000000e+00> : vector<32x64xf32>
    %5 = tpu.matmul %2, %4, %cst {dimension_numbers = #tpu.dot_dimension_numbers<[1], [0], [0], [1], [0, 0, 1, 1], [], []>} : vector<32x32xf32>, vector<32x64xf32>, vector<32x64xf32> -> vector<32x64xf32>
    %c0_7 = arith.constant 0 : index
    %c0_8 = arith.constant 0 : index
    %6 = vector.load %arg4[%c0_7, %c0_8] : memref<1x64xf32, #tpu.memory_space<vmem>>, vector<1x64xf32>
    %7 = vector.broadcast %6 : vector<1x64xf32> to vector<32x64xf32>
    %8 = arith.addf %5, %7 : vector<32x64xf32>
    %9 = vector.extract_strided_slice %8 {offsets = [0, 0], sizes = [32, 32], strides = [1, 1]} : vector<32x64xf32> to vector<32x32xf32>
    %10 = vector.shape_cast %9 : vector<32x32xf32> to vector<1x32x32xf32>
    %11 = vector.extract_strided_slice %8 {offsets = [0, 32], sizes = [32, 32], strides = [1, 1]} : vector<32x64xf32> to vector<32x32xf32>
    %12 = vector.shape_cast %11 : vector<32x32xf32> to vector<1x32x32xf32>
    %c0_9 = arith.constant 0 : index
    %c0_10 = arith.constant 0 : index
    %13 = vector.load %arg5[%c0_9, %c0_10] : memref<32x32xf32, #tpu.memory_space<vmem>>, vector<32x32xf32>
    %cst_11 = arith.constant dense<0.000000e+00> : vector<32x32xf32>
    %14 = tpu.matmul %3, %13, %cst_11 {dimension_numbers = #tpu.dot_dimension_numbers<[1], [0], [0], [1], [0, 0, 1, 1], [], []>} : vector<32x32xf32>, vector<32x32xf32>, vector<32x32xf32> -> vector<32x32xf32>
    %c0_12 = arith.constant 0 : index
    %c0_13 = arith.constant 0 : index
    %15 = vector.load %arg6[%c0_12, %c0_13] : memref<1x32xf32, #tpu.memory_space<vmem>>, vector<1x32xf32>
    %16 = vector.broadcast %15 : vector<1x32xf32> to vector<32x32xf32>
    %17 = arith.addf %14, %16 : vector<32x32xf32>
    %18 = vector.shape_cast %17 : vector<32x32xf32> to vector<1x32x32xf32>
    "tpu.trace_start"() <{level = 10 : i32, message = "bsa,bsc->bac"}> : () -> ()
    %cst_14 = arith.constant dense<0.000000e+00> : vector<1x32x32xf32>
    %19 = tpu.matmul %18, %12, %cst_14 {dimension_numbers = #tpu.dot_dimension_numbers<[1], [1], [2], [2], [0, 0, 0, 2, 1, 2], [0], [0]>} : vector<1x32x32xf32>, vector<1x32x32xf32>, vector<1x32x32xf32> -> vector<1x32x32xf32>
    "tpu.trace_stop"() : () -> ()
    %cst_15 = arith.constant dense<0xFF800000> : vector<1x32xf32>
    %20 = vector.multi_reduction <maximumf>, %19, %cst_15 [2] : vector<1x32x32xf32> to vector<1x32xf32>
    %21 = vector.shape_cast %20 : vector<1x32xf32> to vector<1x32x1xf32>
    %22 = vector.broadcast %21 : vector<1x32x1xf32> to vector<1x32x32xf32>
    %23 = arith.subf %19, %22 : vector<1x32x32xf32>
    %24 = math.exp %23 : vector<1x32x32xf32>
    %cst_16 = arith.constant dense<0.000000e+00> : vector<1x32xf32>
    %25 = vector.multi_reduction <add>, %24, %cst_16 [2] : vector<1x32x32xf32> to vector<1x32xf32>
    %26 = vector.shape_cast %25 : vector<1x32xf32> to vector<1x32x1xf32>
    %27 = tpu.reciprocal %26 {approx = true} : vector<1x32x1xf32> -> vector<1x32x1xf32>
    %28 = vector.broadcast %27 : vector<1x32x1xf32> to vector<1x32x32xf32>
    %29 = arith.mulf %24, %28 : vector<1x32x32xf32>
    "tpu.trace_start"() <{level = 10 : i32, message = "bdc,bac->bda"}> : () -> ()
    %cst_17 = arith.constant dense<0.000000e+00> : vector<1x32x32xf32>
    %30 = tpu.matmul %10, %29, %cst_17 {dimension_numbers = #tpu.dot_dimension_numbers<[2], [2], [1], [1], [0, 0, 0, 1, 1, 1], [0], [0]>} : vector<1x32x32xf32>, vector<1x32x32xf32>, vector<1x32x32xf32> -> vector<1x32x32xf32>
    "tpu.trace_stop"() : () -> ()
    %31 = vector.shape_cast %30 : vector<1x32x32xf32> to vector<32x32xf32>
    %c0_18 = arith.constant 0 : index
    %c0_19 = arith.constant 0 : index
    %32 = vector.load %arg7[%c0_18, %c0_19] : memref<32x32xf32, #tpu.memory_space<vmem>>, vector<32x32xf32>
    %cst_20 = arith.constant dense<0.000000e+00> : vector<32x32xf32>
    %33 = tpu.matmul %31, %32, %cst_20 {dimension_numbers = #tpu.dot_dimension_numbers<[1], [0], [0], [1], [0, 0, 1, 1], [], []>} : vector<32x32xf32>, vector<32x32xf32>, vector<32x32xf32> -> vector<32x32xf32>
    %c0_21 = arith.constant 0 : index
    %c0_22 = arith.constant 0 : index
    %34 = vector.load %arg8[%c0_21, %c0_22] : memref<1x32xf32, #tpu.memory_space<vmem>>, vector<1x32xf32>
    %35 = vector.broadcast %34 : vector<1x32xf32> to vector<32x32xf32>
    %36 = arith.addf %33, %35 : vector<32x32xf32>
    %37 = vector.shape_cast %36 : vector<32x32xf32> to vector<1x32x32xf32>
    %38 = arith.addf %37, %0 : vector<1x32x32xf32>
    %c0_23 = arith.constant 0 : index
    %c0_24 = arith.constant 0 : index
    %c0_25 = arith.constant 0 : index
    %39 = vector.load %arg9[%c0_23, %c0_24, %c0_25] : memref<1x32x32xf32, #tpu.memory_space<vmem>>, vector<1x32x32xf32>
    tpu.vector_store %arg9[%c0_23, %c0_24, %c0_25], %38 {strides = array<i32>} : memref<1x32x32xf32, #tpu.memory_space<vmem>>, vector<1x32x32xf32>,
    return
  }
  func.func @transform_0(%arg0: i32) -> (i32, i32, i32) {
    %c0_i32 = arith.constant 0 : i32
    %c0_i32_0 = arith.constant 0 : i32
    %c0_i32_1 = arith.constant 0 : i32
    return %arg0, %c0_i32, %c0_i32_0 : i32, i32, i32
  }
  func.func @transform_1(%arg0: i32) -> (i32, i32, i32) {
    %c0_i32 = arith.constant 0 : i32
    %c0_i32_0 = arith.constant 0 : i32
    %c0_i32_1 = arith.constant 0 : i32
    return %arg0, %c0_i32, %c0_i32_0 : i32, i32, i32
  }
  func.func @transform_2(%arg0: i32) -> (i32, i32) {
    %c0_i32 = arith.constant 0 : i32
    %c0_i32_0 = arith.constant 0 : i32
    %c0_i32_1 = arith.constant 0 : i32
    return %c0_i32, %c0_i32_0 : i32, i32
  }
  func.func @transform_3(%arg0: i32) -> (i32, i32) {
    %c0_i32 = arith.constant 0 : i32
    %c0_i32_0 = arith.constant 0 : i32
    %c0_i32_1 = arith.constant 0 : i32
    return %c0_i32, %c0_i32_0 : i32, i32
  }
  func.func @transform_4(%arg0: i32) -> (i32, i32) {
    %c0_i32 = arith.constant 0 : i32
    %c0_i32_0 = arith.constant 0 : i32
    %c0_i32_1 = arith.constant 0 : i32
    return %c0_i32, %c0_i32_0 : i32, i32
  }
  func.func @transform_5(%arg0: i32) -> (i32, i32) {
    %c0_i32 = arith.constant 0 : i32
    %c0_i32_0 = arith.constant 0 : i32
    %c0_i32_1 = arith.constant 0 : i32
    return %c0_i32, %c0_i32_0 : i32, i32
  }
  func.func @transform_6(%arg0: i32) -> (i32, i32) {
    %c0_i32 = arith.constant 0 : i32
    %c0_i32_0 = arith.constant 0 : i32
    %c0_i32_1 = arith.constant 0 : i32
    return %c0_i32, %c0_i32_0 : i32, i32
  }
  func.func @transform_7(%arg0: i32) -> (i32, i32) {
    %c0_i32 = arith.constant 0 : i32
    %c0_i32_0 = arith.constant 0 : i32
    %c0_i32_1 = arith.constant 0 : i32
    return %c0_i32, %c0_i32_0 : i32, i32
  }
  func.func @transform_8(%arg0: i32) -> (i32, i32, i32) {
    %c0_i32 = arith.constant 0 : i32
    %c0_i32_0 = arith.constant 0 : i32
    %c0_i32_1 = arith.constant 0 : i32
    return %arg0, %c0_i32, %c0_i32_0 : i32, i32, i32
  }
}

</mosaic_0001>

<bundles_post_ra>
// kernel: cross_att_pallas.1
= control target key start
LH: loop header
LB: loop body
LE: loop exit
PB: predicated region body
PF: predicated region fallthrough
CT: control target
= control target key end

     0   :  { %13 = vsyncpa [#allocation3], 0  ;;  %s1796_s0 = inlined_call_operand.hbm [shape: f32[2,32,32], index: 0, kind: input, shape index: {}, may-alias: {0,8}]   ;;  %s1797_s1 = inlined_call_operand.vmem [shape: f32[2,32,32], index: 1, kind: input, shape index: {}]   ;;  %s1798_s2 = inlined_call_operand.vmem [shape: f32[32,64], index: 2, kind: input, shape index: {}]   ;;  %s1799_s3 = inlined_call_operand.vmem [shape: f32[1,64], index: 3, kind: input, shape index: {}]   ;;  %s1800_s4 = inlined_call_operand.vmem [shape: f32[32,32], index: 4, kind: input, shape index: {}]   ;;  %s1801_s5 = inlined_call_operand.vmem [shape: f32[1,32], index: 5, kind: input, shape index: {}]   ;;  %s1802_s6 = inlined_call_operand.vmem [shape: f32[32,32], index: 6, kind: input, shape index: {}]   ;;  %s1803_s7 = inlined_call_operand.vmem [shape: f32[1,32], index: 7, kind: input, shape index: {}]   ;;  %s1804_s8 = inlined_call_operand.hbm [shape: f32[2,32,32], index: 8, kind: output, shape index: {}, may-alias: {0,8}]  }
   0x1   :  { %15 = vsyncpa [#allocation3 + $0x1], 0 }
   0x2   :  { %16 = vsyncpa [#allocation4], 0 }
   0x3   :  { %18 = vsyncpa [#allocation4 + $0x1], 0  ;;  %s1506_s27 = smov 0   ;;  %s1508_s28 = smov 0  }
   0x4   :  { %s1510_s29 = smov 0   ;;  %s1512_s30 = smov 0  }
   0x5 LB: > { %s1527_s9 = sadd.s32 4294967295, %s1452_s30   ;;  %s1078_s10 = sadd.s32 4294967294, %s1452_s30   ;;  %s1452_s30 = sphi %s1512_s30, %s1819_s30   ;;  %s1448_s29 = sphi %s1510_s29, %s1818_s29   ;;  %s1444_s28 = sphi %s1508_s28, %s1817_s28   ;;  %s1440_s27 = sphi %s1506_s27, %s1816_s27  }
   0x6   : > { %s1531_s11 = sadd.s32 1, %s1452_s30   ;;  %s31_s12 = sadd.s32 1, %s1448_s29 }
   0x7   : > { %s28_s13 = ssub.s32 %s1452_s30, %s1531_s11  ;;  %p38_p0 = scmp.ne.s32.totalorder %s1448_s29, %s1444_s28 }
   0x8   : > { %p29_p1 = scmp.eq.s32.totalorder %s28_s13, 0  ;;  %p39_p2 = scmp.eq.s32.totalorder %s1452_s30, 0 }
   0x9   : > { %p44_p3 = scmp.ne.s32.totalorder %s1444_s28, %s1440_s27  ;;  %p45_p4 = scmp.eq.s32.totalorder %s1527_s9, 0 }
   0xa   : > { %s1543_s14 = scalar_select %p29_p1, %s1448_s29, %s31_s12  }
   0xb   : > { %p1545_p5 = por %p39_p2, %p38_p0  ;;  %p1549_p6 = por %p45_p4, %p44_p3 }
   0xc   : > { %p220_p7 = scmp.eq.s32.totalorder %s1527_s9, 1  ;;  %p226_p8 = scmp.eq.s32.totalorder %s1078_s10, 1 }
   0xd   : > { %p1290_p10 = scmp.lt.s32.totalorder %s1452_s30, 2  ;;  %s264_s19 = sand.u32 1, %s1448_s29  }
   0xe   : > { %p1556_p11 = por %p220_p7, %p38_p0  ;;  %p1560_p12 = por %p226_p8, %p44_p3 }
   0xf   : > { %s1121_s20 = sshll.u32 %s1452_s30, 9  ;;  %s1081_s21 = sshll.u32 %s264_s19, 5 }
  0x10   : > { %s1809_s17 = scalar_select %p1556_p11, 1, 0 }
  0x11   : > { %s1810_s18 = scalar_select %p1560_p12, 1, 0 }
  0x12   : > { %s1569_s24 = scalar_lea.hbm %s1796_s0, %s1121_s20  ;;  %s268_s25 = scalar_lea.vmem [#allocation2], %s1081_s21 }
  0x13   : > { %s275_s26 = sshll.u32 %s268_s25, 4  ;;  %p1573_p13 = pnand %p1290_p10, %p1545_p5  ;;  %s1577_s26 = int_to_ptr.vmem [resolvable:$true] %s275_s26 }
  0x14   : > { %s1579_s12 = scalar_lea.sflag [#allocation3], %s264_s19  ;;  %s1356_s13 = scalar_lea.hbm %s1569_s24, 512 }
  0x15   : > { %p1357_p0 = scmp.ne.s32.totalorder %s1569_s24, %s1356_s13  ;;  %p1358_p1 = pneg %p1573_p13 }
  0x16   : > { %s1361_s21 = scalar_lea.hbm %s1796_s0, 1024  ;;  %p1362_p4 = scmp.lt.u32.totalorder %s1569_s24, %s1796_s0 }
  0x17   : > { %p1359_p2 = pnand %p1358_p1, %p1357_p0  ;;  %p1363_p5 = scmp.lt.u32.totalorder %s1361_s21, %s1356_s13 }
  0x18   : > { %p1365_p8 = scmp.lt.u32.totalorder %s1356_s13, %s1569_s24 }
  0x19   : > { %p1360_p3 = pneg %p1359_p2  ;;  %p1364_p7 = por %p1363_p5, %p1362_p4 }
  0x1b   : > { %p1366_p10 = por %p1365_p8, %p1364_p7 }
  0x1d   : > { %p1367_p9 = pnand %p1366_p10, %p1360_p3 }
  0x1f   : > { %1370 = shalt.err (!%p1367_p9)
}
  0x20   : > { %s1371_s19 = scalar_lea.vmem %s1577_s26, 512  ;;  %s1454_s25 = smov [#allocation2]  }
  0x21   : > { %p1372_p0 = scmp.ne.s32.totalorder %s1577_s26, %s1371_s19  ;;  %s1376_s20 = sshll.u32 %s1454_s25, 4  ;;  %s1377_s20 = int_to_ptr.vmem [resolvable:$false] %s1376_s20 }
  0x22   : > { %s1378_s15 = scalar_lea.vmem %s1377_s20, 1024  ;;  %p1379_p11 = scmp.lt.s32.totalorder %s1577_s26, %s1377_s20 }
  0x23   : > { %p1374_p2 = pnand %p1372_p0, %p1358_p1  ;;  %p1380_p4 = scmp.lt.s32.totalorder %s1378_s15, %s1371_s19 }
  0x25   : > { %p1375_p12 = pneg %p1374_p2  ;;  %p1381_p5 = por %p1380_p4, %p1379_p11 }
  0x27   : > { %p1382_p7 = pnand %p1381_p5, %p1375_p12 }
  0x29   : > { %1385 = shalt.err (!%p1382_p7)
}
  0x2a   : > { %s1455_s13 = smov 128   ;;  %s1456_s21 = smov 8  }
  0x2b   : > { %1285 = dma.hbm_to_vmem [thread:$0]  (!%p1573_p13), %s1569_s24, 512, %s1577_s26, %s1579_s12, %s1455_s13, %s1455_s13, %s1456_s21  }
  0x2c   : > { %p1084_p9 = scmp.ge.s32.totalorder %s1452_s30, 1  ;;  %p291_p1 = scmp.lt.s32.totalorder %s1452_s30, 3 }
  0x2e   : > { %p292_p3 = pnand %p1084_p9, %p291_p1 }
  0x2f   : > { %s1610_s22 = sand.u32 (!%p292_p3), 1, %s1444_s28  }
  0x30   : > { %295 = sbr.rel (%p292_p3) target bundleno = 1414 (0x586), region = 52  ;;  %s1806_s23 = sshll.u32 (!%p292_p3), %s1610_s22, 5 }
  0x31   : > { %s298_s19 = scalar_lea.sflag (!%p292_p3), [#allocation3], %s1610_s22  ;;  %s1616_s25 = scalar_lea.vmem (!%p292_p3), [#allocation2], %s1806_s23 }
  0x37   : > { %1431 = dma.done.wait (%p1549_p6), %s298_s19, 512  }
  0x38   : > { %1433 = vsyncadd (%p1549_p6), %s298_s19, 4294966784  ;;  %p339_p11 = scmp.lt.s32.totalorder %s1527_s9, 1  ;;  %v461_v0 = vld [vmem:[%s1800_s4] sm:$0xff]  ;;  %v462_v1 = vld [vmem:[%s1800_s4 + $0x8] sm:$0xff]  ;;  %vm363_vm0 = vcmask 261120   ;;  %s1812_s12 = sshll.u32 %s1610_s22, 5 }
  0x39   : > { %v352_v2 = vld [vmem:[%s1798_s2] sm:$0xff]  ;;  %v1242_v3 = vpack.c.bf16 %v462_v1, %v461_v0  ;;  %v353_v4 = vld [vmem:[%s1798_s2 + $0x8] sm:$0xff]  ;;  %v463_v5 = vld [vmem:[%s1800_s4 + $0x10] sm:$0xff]  ;;  %s1123_s15 = sshll.u32 %s1527_s9, 9  ;;  %p1813_p12 = scmp.ne.s32.totalorder %s1809_s17, 0 }
  0x3a   : > { %s340_s24 = scalar_select %p339_p11, %s1527_s9, 1  ;;  %v464_v6 = vld [vmem:[%s1800_s4 + $0x18] sm:$0xff]  ;;  %v1234_v7 = vpack.c.bf16 %v353_v4, %v352_v2  ;;  %v354_v9 = vld [vmem:[%s1798_s2 + $0x10] sm:$0xff]  ;;  %v1656_v13 = vld [vmem:[%s1616_s25] sm:$0xff] }
  0x3b   : > { %v1246_v8 = vpack.c.bf16 %v464_v6, %v463_v5  ;;  %v355_v10 = vld [vmem:[%s1798_s2 + $0x18] sm:$0xff]  ;;  %1243 = vmatprep.subr.bf16.mxu1 %v1242_v3  ;;  %1172 = vmatprep.mubr.msk.f32.mxu0 %vm363_vm0, %v1656_v13  ;;  %v1662_v15 = vld [vmem:[%s1616_s25 + $0x8] sm:$0xff]  ;;  %v1666_v17 = vld [vmem:[%s1616_s25 + $0x10] sm:$0xff]  ;;  %s1749_s21 = scalar_lea.hbm %s1804_s8, %s1123_s15  ;;  %s980_s9 = scalar_lea.sflag [#allocation4], %s1610_s22 }
  0x3c   : > { %s1122_s26 = sshll.u32 %s340_s24, 5  ;;  %v1238_v12 = vpack.c.bf16 %v355_v10, %v354_v9  ;;  %1235 = vmatprep.subr.bf16.mxu0 %v1234_v7  ;;  %1245 = vmatpush3.bf16.msra.mxu1 %v1242_v3  ;;  %v1676_v19 = vld [vmem:[%s1616_s25 + $0x18] sm:$0xff]  ;;  %v1094_v20 = vld [vmem:[%s1801_s5] ss:$0 sm:$0xff]  ;;  %s1457_s25 = smov 96   ;;  %vm1259_vm1 = vmpackc.low %vm363_vm0, %vm363_vm0 }
  0x3d   : > { %s1627_s20 = scalar_lea.vmem %s1797_s1, %s1122_s26  ;;  %1237 = vmatpush3.bf16.msra.mxu0 %v1234_v7  ;;  %1247 = vmatprep.subr.bf16.mxu1 %v1246_v8  ;;  %v1089_v21 = vld [vmem:[%s1799_s3] ss:$0 sm:$0xff]  ;;  %s1458_s19 = smov [#allocation5]  }
  0x3e   : > { %v348_v11 = vld [vmem:[%s1627_s20] sm:$0xff]  ;;  %1239 = vmatprep.subr.bf16.mxu0 %v1238_v12  ;;  %v349_v14 = vld [vmem:[%s1627_s20 + $0x8] sm:$0xff]  ;;  %v350_v16 = vld [vmem:[%s1627_s20 + $0x10] sm:$0xff]  ;;  %s1390_s24 = sshll.u32 %s1458_s19, 4  ;;  %s1391_s24 = int_to_ptr.vmem [resolvable:$false] %s1390_s24 }
  0x3f   : > { %1186 = vmatprep.mubr.msk.f32.mxu1 %vm363_vm0, %v348_v11  ;;  %v351_v18 = vld [vmem:[%s1627_s20 + $0x18] sm:$0xff]  ;;  %s1392_s10 = scalar_lea.vmem %s1391_s24, 1024 }
  0x40   : > { %1249 = vmatpush3.bf16.msra.mxu1 %v1246_v8 }
  0x41   : > { %1241 = vmatpush3.bf16.msra.mxu0 %v1238_v12 }
  0x43   : > { %1187 = vmatmul.mubr.msk.f32.vlgmr.msra.gmra.mrb[0].mxu1 %vm363_vm0, %v349_v14 }
  0x44   : > { %1173 = vmatmul.mubr.msk.f32.vlgmr.msra.gmra.mrb[0].mxu0 %vm363_vm0, %v1662_v15  ;;  %1189 = vmatprep.mubr.msk.f32.mxu1 %vm363_vm0, %v350_v16 }
  0x45   : > { %1175 = vmatprep.mubr.msk.f32.mxu0 %vm363_vm0, %v1666_v17 }
  0x47   : > { %1190 = vmatmul.mubr.msk.f32.gmra.mrb[2].mxu1 %vm363_vm0, %v351_v18 }
  0x48   : > { %1176 = vmatmul.mubr.msk.f32.gmra.mrb[2].mxu0 %vm363_vm0, %v1676_v19 }
 0x116   : > { %v1188_v22 = vpop.f32.mrb[0].mxu1 }
 0x117   : > { %v1174_v23 = vpop.f32.mrb[0].mxu0  ;;  %v550_v24 = vpop.f32.mrb[1].mxu1  ;;  %v556_v33 = vadd.f32 %v1188_v22, %v1094_v20  ;;  %v865_v22 = vld [vmem:[%s1802_s6 + $0x10] sm:$0xff] }
 0x118   : > { %v1687_v25 = vadd.f32 %v1174_v23, %v1089_v21  ;;  %v442_v26 = vpop.f32.mrb[1].mxu0  ;;  %v551_v27 = vadd.f32 %v1094_v20, %v550_v24  ;;  %v866_v24 = vld [vmem:[%s1802_s6 + $0x18] sm:$0xff] }
 0x119   : > { %v443_v28 = vadd.f32 %v1089_v21, %v442_v26  ;;  %v1274_v26 = vpack.c.bf16 %v866_v24, %v865_v22 }
 0x11a   : > { %569 = vxpose.xlu1.b32.start [1/4] (short) (narrow) %v551_v27, 32  ;;  %v1191_v29 = vpop.f32.mrb[2].mxu1 }
 0x11b   : > { %v1177_v30 = vpop.f32.mrb[2].mxu0  ;;  %1214 = vmatprep.mubr.msk.f32.mxu1 %vm363_vm0, %v443_v28  ;;  %v1330_v31 = vpack.i.bf16 %v1687_v25, %v443_v28  ;;  %v560_v32 = vpop.f32.mrb[3].mxu1  ;;  %v566_v39 = vadd.f32 %v1191_v29, %v1094_v20 }
 0x11c   : > { %v1691_v34 = vadd.f32 %v1177_v30, %v1089_v21  ;;  %v452_v35 = vpop.f32.mrb[3].mxu0  ;;  %v561_v37 = vadd.f32 %v1094_v20, %v560_v32  ;;  %v863_v20 = vld [vmem:[%s1802_s6] sm:$0xff] }
 0x11d   : > { %v1693_v36 = vadd.f32 %v1089_v21, %v452_v35  ;;  %1331 = vrot.lane.b32.xlu0 %v1330_v31, %s1457_s25  ;;  %v864_v21 = vld [vmem:[%s1802_s6 + $0x8] sm:$0xff] }
 0x11e   : > { %570 = vxpose.xlu1.b32.cont [2/4] (short) (narrow) %v556_v33, 32  ;;  %v1270_v23 = vpack.c.bf16 %v864_v21, %v863_v20 }
 0x11f   : > { %v1335_v38 = vpack.i.bf16 %v1691_v34, %v1693_v36 }
 0x121   : > { %1336 = vrot.lane.b32.xlu0 %v1335_v38, %s1457_s25  ;;  %s338_s25 = scalar_lea.vmem [#allocation5], %s1812_s12 }
 0x122   : > { %571 = vxpose.xlu1.b32.cont [3/4] (short) (narrow) %v561_v37, 32  ;;  %s993_s20 = sshll.u32 %s338_s25, 4  ;;  %s1742_s20 = int_to_ptr.vmem [resolvable:$true] %s993_s20 }
 0x123   : > { %s1386_s16 = scalar_lea.vmem %s1742_s20, 512  ;;  %p1393_p10 = scmp.lt.s32.totalorder %s1742_s20, %s1391_s24 }
 0x124   : > { %p1387_p6 = scmp.ne.s32.totalorder %s1742_s20, %s1386_s16  ;;  %p1394_p0 = scmp.lt.s32.totalorder %s1392_s10, %s1386_s16 }
 0x126   : > { %572 = vxpose.xlu1.b32.end [4/4] (short) (narrow) %v566_v39, 32  ;;  %p1388_p13 = pnand %p1387_p6, %p1813_p12  ;;  %p1395_p2 = por %p1394_p0, %p1393_p10 }
 0x128   : > { %p1389_p8 = pneg %p1388_p13 }
 0x12a   : > { %p1396_p4 = pnand %p1395_p2, %p1389_p8 }
 0x18f   : > { %v1332_v40 = vpop.permute.xlu0 %1331 }
 0x190   : > { %v1334_v41 = vunpack.i.h.bf16 %v1332_v40  ;;  %v1333_v42 = vunpack.i.l.bf16 %v1332_v40 }
 0x192   : > { %v1250_v43 = vpack.c.bf16 %v1334_v41, %v1333_v42 }
 0x193   : > { %v1337_v44 = vpop.permute.xlu0 %1336 }
 0x194   : > { %v1339_v45 = vunpack.i.h.bf16 %v1337_v44  ;;  %v1338_v46 = vunpack.i.l.bf16 %v1337_v44  ;;  %1251 = vmatprep.subr.bf16.mxu0 %v1250_v43 }
 0x195   : > { %1253 = vmatpush3.bf16.msra.mxu0 %v1250_v43 }
 0x196   : > { %v1254_v47 = vpack.c.bf16 %v1339_v45, %v1338_v46 }
 0x198   : > { %1255 = vmatprep.subr.bf16.mxu0 %v1254_v47 }
 0x199   : > { %1257 = vmatpush3.bf16.msra.mxu0 %v1254_v47 }
 0x19a   : > { %v585_v48 = vpop.trf.xlu1  ;;  %1271 = vmatprep.subr.bf16.mxu0 %v1270_v23 }
 0x19b   : > { %1200 = vmatprep.mubr.msk.f32.mxu0 %vm363_vm0, %v585_v48 }
 0x19e   : > { %v586_v49 = vpop.trf.xlu1 }
 0x19f   : > { %1201 = vmatmul.mubr.msk.f32.vlgmr.msra.gmra.mrb[4].mxu0 %vm363_vm0, %v586_v49 }
 0x1a0   : > { %1273 = vmatpush3.bf16.msra.mxu0 %v1270_v23 }
 0x1a1   : > { %1275 = vmatprep.subr.bf16.mxu0 %v1274_v26 }
 0x1a2   : > { %v587_v50 = vpop.trf.xlu1 }
 0x1a3   : > { %1203 = vmatprep.mubr.msk.f32.mxu0 %vm363_vm0, %v587_v50 }
 0x1a4   : > { %1277 = vmatpush3.bf16.msra.mxu0 %v1274_v26 }
 0x1a6   : > { %v588_v51 = vpop.trf.xlu1 }
 0x1a7   : > { %1204 = vmatmul.mubr.msk.f32.gmra.mrb[6].mxu0 %vm363_vm0, %v588_v51 }
 0x272   : > { %v1202_v52 = vpop.f32.mrb[4].mxu0 }
 0x273   : > { %v695_v53 = vpop.f32.mrb[5].mxu0  ;;  %v717_v54 = vsel %vm363_vm0, %v1202_v52, -inf }
 0x274   : > { %718 = vmax.xlane.f32.xlu1 %v717_v54  ;;  %v714_v55 = vsel %vm363_vm0, %v695_v53, -inf }
 0x275   : > { %715 = vmax.xlane.f32.xlu0 %v714_v55 }
 0x27a   : > { %v1205_v56 = vpop.f32.mrb[6].mxu0 }
 0x27b   : > { %v705_v57 = vpop.f32.mrb[7].mxu0  ;;  %v723_v59 = vsel %vm363_vm0, %v1205_v56, -inf }
 0x27c   : > { %v720_v58 = vsel %vm363_vm0, %v705_v57, -inf }
 0x27d   : > { %721 = vmax.xlane.f32.xlu0 %v720_v58 }
 0x281   : > { %724 = vmax.xlane.f32.xlu0 %v723_v59 }
 0x301   : > { %v719_v60 = vpop.xlane.xlu1 %718 }
 0x302   : > { %v727_v61 = vsub.f32 %v1202_v52, %v719_v60  ;;  %v716_v62 = vpop.xlane.xlu0 %715 }
 0x303   : > { %v726_v63 = vsub.f32 %v695_v53, %v716_v62 }
 0x304   : > { %v732_v0 = vmul.f32 1.442695, %v727_v61 }
 0x305   : > { %v730_v1 = vmul.f32 1.442695, %v726_v63 }
 0x307   : > { %1340 = vpow2.f32 %v730_v1 }
 0x308   : > { %1342 = vpow2.f32 %v732_v0 }
 0x30a   : > { %v722_v2 = vpop.xlane.xlu0 %721 }
 0x30b   : > { %v728_v3 = vsub.f32 %v705_v57, %v722_v2 }
 0x30d   : > { %v734_v4 = vmul.f32 1.442695, %v728_v3 }
 0x30e   : > { %v725_v5 = vpop.xlane.xlu0 %724 }
 0x30f   : > { %1344 = vpow2.f32 %v734_v4  ;;  %v729_v6 = vsub.f32 %v1205_v56, %v725_v5 }
 0x311   : > { %v1341_v7 = vpop.eup %1340  ;;  %v736_v8 = vmul.f32 1.442695, %v729_v6 }
 0x312   : > { %v738_v9 = vsel %vm363_vm0, %v1341_v7, 0.0  ;;  %v1343_v10 = vpop.eup %1342 }
 0x313   : > { %1346 = vpow2.f32 %v736_v8  ;;  %739 = vadd.xlane.f32.xlu0 %v738_v9  ;;  %v741_v11 = vsel %vm363_vm0, %v1343_v10, 0.0 }
 0x317   : > { %742 = vadd.xlane.f32.xlu0 %v741_v11 }
 0x319   : > { %v1345_v12 = vpop.eup %1344 }
 0x31a   : > { %v744_v14 = vsel %vm363_vm0, %v1345_v12, 0.0 }
 0x31b   : > { %745 = vadd.xlane.f32.xlu0 %v744_v14 }
 0x31d   : > { %v1347_v16 = vpop.eup %1346 }
 0x31e   : > { %v747_v18 = vsel %vm363_vm0, %v1347_v16, 0.0 }
 0x31f   : > { %748 = vadd.xlane.f32.xlu1 %v747_v18 }
 0x3a0   : > { %v740_v27 = vpop.xlane.xlu0 %739 }
 0x3a1   : > { %1348 = vrcp.f32 %v740_v27 }
 0x3a4   : > { %v743_v28 = vpop.xlane.xlu0 %742 }
 0x3a5   : > { %1350 = vrcp.f32 %v743_v28 }
 0x3a8   : > { %v746_v29 = vpop.xlane.xlu0 %745 }
 0x3a9   : > { %1352 = vrcp.f32 %v746_v29 }
 0x3ab   : > { %v1349_v31 = vpop.eup %1348 }
 0x3ac   : > { %v749_v30 = vpop.xlane.xlu1 %748  ;;  %v754_v33 = vmul.f32 %v1349_v31, %v1341_v7 }
 0x3ad   : > { %1354 = vrcp.f32 %v749_v30 }
 0x3af   : > { %v1351_v32 = vpop.eup %1350 }
 0x3b0   : > { %v755_v35 = vmul.f32 %v1351_v32, %v1343_v10 }
 0x3b2   : > { %v1258_v37 = vpack.c.bf16 %v755_v35, %v754_v33 }
 0x3b3   : > { %v1353_v38 = vpop.eup %1352 }
 0x3b4   : > { %1260 = vmatprep.subr.msk.bf16.mxu1 %vm1259_vm1, %v1258_v37  ;;  %v756_v40 = vmul.f32 %v1353_v38, %v1345_v12 }
 0x3b5   : > { %1263 = vmatpush3.bf16.xpose.msk.msra.mxu1 %vm1259_vm1, %v1258_v37 }
 0x3b7   : > { %v1355_v39 = vpop.eup %1354 }
 0x3b8   : > { %v757_v41 = vmul.f32 %v1355_v39, %v1347_v16 }
 0x3ba   : > { %v1264_v42 = vpack.c.bf16 %v757_v41, %v756_v40 }
 0x3bc   : > { %1266 = vmatprep.subr.msk.bf16.mxu1 %vm1259_vm1, %v1264_v42 }
 0x3bd   : > { %1269 = vmatpush3.bf16.xpose.msk.msra.mxu1 %vm1259_vm1, %v1264_v42 }
 0x3c4   : > { %1215 = vmatmul.mubr.msk.f32.vlgmr.msra.gmra.mrb[4].mxu1 %vm363_vm0, %v1687_v25  ;;  %v1111_v25 = vld [vmem:[%s1803_s7] ss:$0 sm:$0xff] }
 0x3c5   : > { %1217 = vmatprep.mubr.msk.f32.mxu1 %vm363_vm0, %v1693_v36 }
 0x3c8   : > { %1218 = vmatmul.mubr.msk.f32.gmra.mrb[6].mxu1 %vm363_vm0, %v1691_v34 }
 0x497   : > { %v1216_v43 = vpop.f32.mrb[4].mxu1 }
 0x498   : > { %v844_v44 = vpop.f32.mrb[5].mxu1 }
 0x499   : > { %1228 = vmatprep.mubr.msk.f32.mxu0 %vm363_vm0, %v844_v44 }
 0x49a   : > { %1229 = vmatmul.mubr.msk.f32.vlgmr.msra.gmra.mrb[8].mxu0 %vm363_vm0, %v1216_v43 }
 0x49b   : > { %v1219_v45 = vpop.f32.mrb[6].mxu1 }
 0x49c   : > { %v854_v46 = vpop.f32.mrb[7].mxu1 }
 0x49d   : > { %1231 = vmatprep.mubr.msk.f32.mxu0 %vm363_vm0, %v854_v46 }
 0x49e   : > { %1232 = vmatmul.mubr.msk.f32.gmra.mrb[10].mxu0 %vm363_vm0, %v1219_v45 }
 0x56d   : > { %v1230_v36 = vpop.f32.mrb[8].mxu0 }
 0x56e   : > { %v958_v47 = vadd.f32 %v1230_v36, %v1111_v25  ;;  %v952_v34 = vpop.f32.mrb[9].mxu0 }
 0x56f   : > { %v953_v48 = vadd.f32 %v1111_v25, %v952_v34 }
 0x570   : > { %v972_v49 = vadd.f32 %v958_v47, %v1662_v15 }
 0x571   : > { %v971_v50 = vadd.f32 %v953_v48, %v1656_v13  ;;  %v1233_v51 = vpop.f32.mrb[10].mxu0 }
 0x572   : > { %976 = vst.msk [vmem:[%s338_s25 + $0x8] sm:$0xff] %vm363_vm0, %v972_v49  ;;  %v968_v52 = vadd.f32 %v1233_v51, %v1111_v25  ;;  %v962_v53 = vpop.f32.mrb[11].mxu0 }
 0x573   : > { %975 = vst.msk [vmem:[%s338_s25] sm:$0xff] %vm363_vm0, %v971_v50  ;;  %v963_v15 = vadd.f32 %v1111_v25, %v962_v53 }
 0x574   : > { %v974_v54 = vadd.f32 %v968_v52, %v1676_v19 }
 0x575   : > { %v973_v13 = vadd.f32 %v963_v15, %v1666_v17 }
 0x576   : > { %978 = vst.msk [vmem:[%s338_s25 + $0x18] sm:$0xff] %vm363_vm0, %v974_v54 }
 0x577   : > { %977 = vst.msk [vmem:[%s338_s25 + $0x10] sm:$0xff] %vm363_vm0, %v973_v13 }
 0x578   : > { %1399 = shalt.err (!%p1396_p4)
}
 0x579   : > { %s1400_s26 = scalar_lea.hbm %s1749_s21, 512  ;;  %s1404_s15 = scalar_lea.hbm %s1804_s8, 1024 }
 0x57a   : > { %p1401_p5 = scmp.ne.s32.totalorder %s1749_s21, %s1400_s26  ;;  %p1405_p1 = scmp.lt.u32.totalorder %s1749_s21, %s1804_s8 }
 0x57b   : > { %p1406_p3 = scmp.lt.u32.totalorder %s1404_s15, %s1400_s26  ;;  %p1408_p6 = scmp.lt.u32.totalorder %s1400_s26, %s1749_s21 }
 0x57c   : > { %p1402_p7 = pnand %p1401_p5, %p1813_p12 }
 0x57d   : > { %p1407_p11 = por %p1406_p3, %p1405_p1 }
 0x57e   : > { %p1403_p9 = pneg %p1402_p7 }
 0x57f   : > { %p1409_p13 = por %p1408_p6, %p1407_p11 }
 0x581   : > { %p1410_p8 = pnand %p1409_p13, %p1403_p9 }
 0x583   : > { %1413 = shalt.err (!%p1410_p8)
}
 0x584   : > { %s1459_s16 = smov 128   ;;  %s1460_s19 = smov 8  }
 0x585   : > { %1280 = dma.vmem_to_hbm [thread:$0]  (%p1813_p12), %s1742_s20, 512, %s1749_s21, %s980_s9, %s1459_s16, %s1459_s16, %s1460_s19  }
 0x586 PF: > { %s1008_s24 = sand.u32 1, %s1440_s27   ;;  %p1814_p10 = scmp.ne.s32.totalorder %s1810_s18, 0 }
 0x587   : > { %p1815_p0 = scmp.ge.s32.totalorder %s1452_s30, 2  ;;  %s1009_s10 = scalar_lea.sflag [#allocation4], %s1008_s24 }
 0x589   : > { %p1287_p2 = pnand %p1815_p0, %p1814_p10 }
 0x58b   : > { %1435 = dma.done.wait (!%p1287_p2), %s1009_s10, 512  }
 0x58c   : > { %1437 = vsyncadd (!%p1287_p2), %s1009_s10, 4294966784  ;;  %p21_p4 = scmp.ge.s32.totalorder %s1531_s11, 4   ;;  %s1816_s27 = smov %s1444_s28 }
 0x58d   : > { %s1817_s28 = smov %s1448_s29  ;;  %s1818_s29 = smov %s1543_s14 }
 0x58e   : > { %s1819_s30 = smov %s1531_s11  ;;  %23 = sbr.rel (!%p21_p4) target bundleno = 5 (0x5), region = 100 }
 0x595   :  { %1014 = vsyncpa [#allocation3], 1 }
 0x596   :  { %1016 = vsyncpa [#allocation3 + $0x1], 1 }
 0x597   :  { %1017 = vsyncpa [#allocation4], 1 }
 0x598   :  { %1019 = vsyncpa [#allocation4 + $0x1], 1 }

</bundles_post_ra>
